<compile_context>
chip_gen: v6e
topology: v6e:2x2x1
jax: 0.10.0
libtpu: 0.0.40
codegen_flags: <defaults>
</compile_context>

<pallas_src>
import numpy as np
import jax
import jax.numpy as jnp
from jax.experimental import pallas as pl
from jax.experimental.pallas import tpu as pltpu


PASSTHROUGH = 64                 # leading features copied through unchanged
MAX_BATCH_TILE = 4096            # rows per grid step (multiple of 8)
_VMEM_IO_BUDGET = 24 * 1024 * 1024   # double-buffered in+out tile budget (bytes)


def _cross_partial_residual_kernel(x_ref, *rest):
    """rest = (w1_ref, ..., wk_ref, o_ref).

    x_ref : [tb, 64 + in0]       full input tile (pass-through + MLP features)
    w_i   : padded, pre-transposed weights (resident across grid steps)
            w_1 : [64 + in0, out1]   (first 64 rows zero)
            w_k : [in_k, 64 + out_k] (first 64 cols zero)
    o_ref : [tb, 64 + out_k]
    """
    w_refs = rest[:-1]
    o_ref = rest[-1]

    x = x_ref[...]
    h = x
    for w_ref in w_refs:
        # Linear (no bias) on the MXU with f32 accumulation, ReLU on the VPU.
        h = jnp.dot(h, w_ref[...],
                    preferred_element_type=jnp.float32,
                    precision=jax.lax.Precision.HIGHEST)
        h = jnp.maximum(h, 0.0)
    # h is now [tb, 64 + out_k] with zeros in lanes [0, 64) (zero-padded last W).

    tb, out_dim = o_ref.shape
    lane = jax.lax.broadcasted_iota(jnp.int32, (tb, out_dim), 1)

    # Align the pass-through source to the output width (static-shape branch).
    x_width = x.shape[1]
    if x_width >= out_dim:
        xa = x[:, :out_dim]
    else:
        xa = jnp.concatenate(
            [x, jnp.zeros((tb, out_dim - x_width), x.dtype)], axis=-1)

    # Single full-tile store: exact pass-through in lanes [0,64), MLP result after.
    o_ref[...] = jnp.where(lane < PASSTHROUGH, xa, h).astype(o_ref.dtype)


def _pad_weights_for_kernel(weights_t):
    """Zero-pad first weight's K dim and last weight's N dim by PASSTHROUGH."""
    ws = [jnp.asarray(w, jnp.float32) for w in weights_t]
    ws[0] = jnp.pad(ws[0], ((PASSTHROUGH, 0), (0, 0)))   # leading zero rows
    ws[-1] = jnp.pad(ws[-1], ((0, 0), (PASSTHROUGH, 0)))  # leading zero cols
    return ws


def _choose_batch_tile(batch, x_width, out_dim, itemsize, batch_tile):
    def round_up8(v):
        return ((v + 7) // 8) * 8

    if batch_tile is not None:
        tb = min(int(batch_tile), batch)
    else:
        tb = min(batch, MAX_BATCH_TILE)
        # Force >= 2 grid steps once there is enough work, so the "parallel"
        # batch axis actually shards across v7x's two TensorCores.
        if batch >= 16:
            tb = min(tb, round_up8(pl.cdiv(batch, 2)))

    if tb < batch:
        tb = max(8, (tb // 8) * 8)   # (8,128) sublane constraint on block shape

    # Shrink tile if the double-buffered in+out tiles would blow the VMEM budget.
    while tb > 8 and 2 * tb * (x_width + out_dim) * itemsize > _VMEM_IO_BUDGET:
        tb = max(8, ((tb // 2) // 8) * 8)
    return tb


def cross_partial_residual(x, weights_t, *, batch_tile=None):
    """x: [B, 64 + in_features[0]] f32; weights_t: list of [in_feat, out_feat]."""
    x = jnp.asarray(x)
    batch, x_width = x.shape
    in0 = weights_t[0].shape[0]
    assert x_width == PASSTHROUGH + in0, "x width must be 64 + in_features[0]"
    out_dim = PASSTHROUGH + weights_t[-1].shape[1]

    w_pad = _pad_weights_for_kernel(weights_t)

    itemsize = jnp.dtype(x.dtype).itemsize
    tb = _choose_batch_tile(batch, x_width, out_dim, itemsize, batch_tile)
    grid = (pl.cdiv(batch, tb),)

    in_specs = [pl.BlockSpec((tb, x_width), lambda i: (i, 0))]
    # Weights: constant index_map -> stay resident in VMEM for the whole call.
    for w in w_pad:
        in_specs.append(pl.BlockSpec(w.shape, lambda i: (0, 0)))

    io_bytes = 2 * tb * (x_width + out_dim) * itemsize          # double-buffered
    w_bytes = sum(int(w.size) * 4 for w in w_pad)
    vmem_limit = int(min(max(io_bytes + w_bytes + (8 << 20), 32 << 20), 56 << 20))

    return pl.pallas_call(
        _cross_partial_residual_kernel,
        out_shape=jax.ShapeDtypeStruct((batch, out_dim), x.dtype),
        grid=grid,
        in_specs=in_specs,
        out_specs=pl.BlockSpec((tb, out_dim), lambda i: (i, 0)),
        compiler_params=pltpu.CompilerParams(
            dimension_semantics=("parallel",),
            vmem_limit_bytes=vmem_limit),
    )(x, *w_pad)


def reference_forward(x, weights_t):
    """Pure-JAX reference matching the PyTorch module."""
    h = x[:, PASSTHROUGH:]
    for w in weights_t:
        h = jnp.maximum(
            jnp.dot(h, w, precision=jax.lax.Precision.HIGHEST), 0.0)
    return jnp.concatenate([x[:, :PASSTHROUGH], h], axis=1)


def _make_weights(key, in_features, out_features):
    """Deterministic nn.Linear-like init ([out,in], kaiming bound), pre-transposed."""
    keys = jax.random.split(key, len(in_features))
    weights_t = []
    for kw, fi, fo in zip(keys, in_features, out_features):
        bound = 1.0 / np.sqrt(fi)
        w = jax.random.uniform(kw, (fo, fi), minval=-bound, maxval=bound,
                               dtype=jnp.float32)
        weights_t.append(w.T)   # [in_feat, out_feat]
    return weights_t


if __name__ == "__main__":
    # Module config: two (Linear, ReLU) pairs, like
    #   CrossPartialResidualLayer(in_features=[32, 48], out_features=[48, 32])
    in_features = [32, 48]
    out_features = [48, 32]
    x_dim = PASSTHROUGH + in_features[0]     # 64 + 32 = 96
    out_dim = PASSTHROUGH + out_features[-1]  # 64 + 32 = 96

    key = jax.random.PRNGKey(0)
    kx1, kx2, kw = jax.random.split(key, 3)
    weights_t = _make_weights(kw, in_features, out_features)

    # Test 1: small batch, single grid step.
    batch = 8
    x = jax.random.normal(kx1, (batch, x_dim), dtype=jnp.float32)
    out = jax.block_until_ready(cross_partial_residual(x, weights_t))
    ref = jax.block_until_ready(reference_forward(x, weights_t))
    assert out.shape == (batch, out_dim)
    np.testing.assert_allclose(np.asarray(out), np.asarray(ref), rtol=1e-5, atol=1e-5)

    # Test 2: explicit small tile -> 3-step tiled/pipelined path.
    batch2 = 48
    x2 = jax.random.normal(kx2, (batch2, x_dim), dtype=jnp.float32)
    out2 = jax.block_until_ready(cross_partial_residual(x2, weights_t, batch_tile=16))
    ref2 = jax.block_until_ready(reference_forward(x2, weights_t))
    assert out2.shape == (batch2, out_dim)
    np.testing.assert_allclose(np.asarray(out2), np.asarray(ref2), rtol=1e-5, atol=1e-5)

    # Test 3: default tile selection (>= 2 grid steps for 2-TC sharding).
    out3 = jax.block_until_ready(cross_partial_residual(x2, weights_t))
    np.testing.assert_allclose(np.asarray(out3), np.asarray(ref2), rtol=1e-5, atol=1e-5)

    print("KERNEL_OK")
</pallas_src>

<mosaic_0001>
module attributes {stable_mosaic.version = 11 : i64} {
  func.func @_cross_partial_residual_kernel(%arg0: i32, %arg1: memref<8x96xf32, #tpu.memory_space<vmem>>, %arg2: memref<96x48xf32, #tpu.memory_space<vmem>>, %arg3: memref<48x96xf32, #tpu.memory_space<vmem>>, %arg4: memref<8x96xf32, #tpu.memory_space<vmem>>) attributes {dimension_semantics = [#tpu.dimension_semantics<parallel>], iteration_bounds = array<i64: 1>, scalar_prefetch = 0 : i64, scratch_operands = 0 : i64, tpu.core_type = #tpu.core_type<tc>, window_params = [{transform_indices = @transform_0, window_bounds = array<i64: 8, 96>}, {pipeline_mode = #tpu.pipeline_mode<synchronous>, transform_indices = @transform_1, window_bounds = array<i64: 96, 48>}, {pipeline_mode = #tpu.pipeline_mode<synchronous>, transform_indices = @transform_2, window_bounds = array<i64: 48, 96>}, {transform_indices = @transform_3, window_bounds = array<i64: 8, 96>}]} {
    %c0 = arith.constant 0 : index
    %c0_0 = arith.constant 0 : index
    %0 = vector.load %arg1[%c0, %c0_0] : memref<8x96xf32, #tpu.memory_space<vmem>>, vector<8x96xf32>
    %c0_1 = arith.constant 0 : index
    %c0_2 = arith.constant 0 : index
    %1 = vector.load %arg2[%c0_1, %c0_2] : memref<96x48xf32, #tpu.memory_space<vmem>>, vector<96x48xf32>
    %cst = arith.constant dense<0.000000e+00> : vector<8x48xf32>
    %2 = tpu.matmul %0, %1, %cst {dimension_numbers = #tpu.dot_dimension_numbers<[1], [0], [0], [1], [0, 0, 1, 1], [], []>, precision = #tpu.contract_precision<fp32>} : vector<8x96xf32>, vector<96x48xf32>, vector<8x48xf32> -> vector<8x48xf32>
    %cst_3 = arith.constant 0.000000e+00 : f32
    %3 = vector.broadcast %cst_3 : f32 to vector<8x48xf32>
    %4 = arith.maximumf %2, %3 : vector<8x48xf32>
    %c0_4 = arith.constant 0 : index
    %c0_5 = arith.constant 0 : index
    %5 = vector.load %arg3[%c0_4, %c0_5] : memref<48x96xf32, #tpu.memory_space<vmem>>, vector<48x96xf32>
    %cst_6 = arith.constant dense<0.000000e+00> : vector<8x96xf32>
    %6 = tpu.matmul %4, %5, %cst_6 {dimension_numbers = #tpu.dot_dimension_numbers<[1], [0], [0], [1], [0, 0, 1, 1], [], []>, precision = #tpu.contract_precision<fp32>} : vector<8x48xf32>, vector<48x96xf32>, vector<8x96xf32> -> vector<8x96xf32>
    %cst_7 = arith.constant 0.000000e+00 : f32
    %7 = vector.broadcast %cst_7 : f32 to vector<8x96xf32>
    %8 = arith.maximumf %6, %7 : vector<8x96xf32>
    %9 = tpu.iota {dimensions = array<i32: 1>} : vector<8x96xi32>
    %c64_i32 = arith.constant 64 : i32
    %10 = vector.broadcast %c64_i32 : i32 to vector<8x96xi32>
    %11 = arith.cmpi slt, %9, %10 : vector<8x96xi32>
    %12 = arith.select %11, %0, %8 : vector<8x96xi1>, vector<8x96xf32>
    %c0_8 = arith.constant 0 : index
    %c0_9 = arith.constant 0 : index
    %13 = vector.load %arg4[%c0_8, %c0_9] : memref<8x96xf32, #tpu.memory_space<vmem>>, vector<8x96xf32>
    tpu.vector_store %arg4[%c0_8, %c0_9], %12 {strides = array<i32>} : memref<8x96xf32, #tpu.memory_space<vmem>>, vector<8x96xf32>,
    return
  }
  func.func @transform_0(%arg0: i32) -> (i32, i32) {
    %c0_i32 = arith.constant 0 : i32
    %c0_i32_0 = arith.constant 0 : i32
    return %arg0, %c0_i32 : i32, i32
  }
  func.func @transform_1(%arg0: i32) -> (i32, i32) {
    %c0_i32 = arith.constant 0 : i32
    %c0_i32_0 = arith.constant 0 : i32
    %c0_i32_1 = arith.constant 0 : i32
    return %c0_i32, %c0_i32_0 : i32, i32
  }
  func.func @transform_2(%arg0: i32) -> (i32, i32) {
    %c0_i32 = arith.constant 0 : i32
    %c0_i32_0 = arith.constant 0 : i32
    %c0_i32_1 = arith.constant 0 : i32
    return %c0_i32, %c0_i32_0 : i32, i32
  }
  func.func @transform_3(%arg0: i32) -> (i32, i32) {
    %c0_i32 = arith.constant 0 : i32
    %c0_i32_0 = arith.constant 0 : i32
    return %arg0, %c0_i32 : i32, i32
  }
}

</mosaic_0001>

<bundles_post_ra>
// kernel: tpu_custom_call.1
= control target key start
LH: loop header
LB: loop body
LE: loop exit
PB: predicated region body
PF: predicated region fallthrough
CT: control target
= control target key end

     0   :  { %v1560_v3 = vmov 0.0   ;;  %vm1561_vm0 = vmmov 0   ;;  %s2066_s0 = inlined_call_operand.vmem [shape: f32[8,96], index: 0, kind: input, shape index: {}]   ;;  %s2067_s1 = inlined_call_operand.vmem [shape: f32[96,48], index: 1, kind: input, shape index: {}]   ;;  %s2068_s2 = inlined_call_operand.vmem [shape: f32[48,96], index: 2, kind: input, shape index: {}]   ;;  %s2069_s3 = inlined_call_operand.hbm [shape: f32[8,96], index: 3, kind: output, shape index: {}]  }
   0x1   :  { %v27_v0 = vld [vmem:[%s2067_s1 + $0x58] sm:$0xff]  ;;  %v26_v1 = vld [vmem:[%s2067_s1 + $0x50] sm:$0xff]  ;;  %v25_v2 = vld [vmem:[%s2067_s1 + $0x48] sm:$0xff]  ;;  %1283 = vmatprep.subr.mxu0 %v1560_v3  ;;  %1310 = vmatprep.subr.mxu1 %v1560_v3 }
   0x2   :  { %v1593_v4 = vand.u32 4294901760, %v27_v0  ;;  %v1595_v5 = vand.u32 4294901760, %v26_v1  ;;  %v1597_v6 = vand.u32 4294901760, %v25_v2  ;;  %v24_v7 = vld [vmem:[%s2067_s1 + $0x40] sm:$0xff]  ;;  %v23_v8 = vld [vmem:[%s2067_s1 + $0x38] sm:$0xff]  ;;  %v22_v9 = vld [vmem:[%s2067_s1 + $0x30] sm:$0xff]  ;;  %1307 = vmatprep.mubr.msk.f32.mxu0 %vm1561_vm0, %v1560_v3  ;;  %1334 = vmatprep.mubr.msk.f32.mxu1 %vm1561_vm0, %v1560_v3 }
   0x3   :  { %v1609_v10 = vand.u32 4294901760, %v24_v7  ;;  %v1611_v11 = vand.u32 4294901760, %v23_v8  ;;  %v1613_v12 = vand.u32 4294901760, %v22_v9  ;;  %v21_v13 = vld [vmem:[%s2067_s1 + $0x28] sm:$0xff]  ;;  %v20_v14 = vld [vmem:[%s2067_s1 + $0x20] sm:$0xff]  ;;  %v19_v19 = vld [vmem:[%s2067_s1 + $0x18] sm:$0xff] }
   0x4   :  { %1284 = vmatpush3.msra.mxu0 %v1593_v4  ;;  %v1627_v15 = vsub.f32 %v27_v0, %v1593_v4  ;;  %v1630_v16 = vsub.f32 %v26_v1, %v1595_v5  ;;  %v1632_v17 = vand.u32 4294901760, %v21_v13  ;;  %v1635_v18 = vsub.f32 %v25_v2, %v1597_v6 }
   0x5   :  { %1285 = vmatprep.subr.mxu0 %v1560_v3  ;;  %v1642_v20 = vsub.f32 %v24_v7, %v1609_v10  ;;  %v1645_v21 = vsub.f32 %v23_v8, %v1611_v11 }
   0x6   :  { %8 = vsyncpa [#allocation3], 0  ;;  %1286 = vmatpush3.msra.mxu0 %v1595_v5  ;;  %v130_v22 = vand.u32 4294901760, %v1627_v15  ;;  %v137_v23 = vand.u32 4294901760, %v1630_v16  ;;  %v144_v24 = vand.u32 4294901760, %v1635_v18  ;;  %v1651_v25 = vand.u32 4294901760, %v20_v14 }
   0x7   :  { %v18_v26 = vld [vmem:[%s2067_s1 + $0x10] sm:$0xff]  ;;  %1287 = vmatprep.subr.mxu0 %v1560_v3  ;;  %v151_v27 = vand.u32 4294901760, %v1642_v20  ;;  %v1658_v28 = vand.u32 4294901760, %v19_v19  ;;  %v158_v29 = vand.u32 4294901760, %v1645_v21  ;;  %v1662_v30 = vsub.f32 %v22_v9, %v1613_v12  ;;  %v17_v34 = vld [vmem:[%s2067_s1 + $0x8] sm:$0xff]  ;;  %v1686_v37 = vld [vmem:[%s2066_s0] sm:$0xff] }
   0x8   :  { %1288 = vmatpush3.msra.mxu0 %v1597_v6  ;;  %v131_v31 = vsub.f32 %v1627_v15, %v130_v22  ;;  %v138_v32 = vsub.f32 %v1630_v16, %v137_v23  ;;  %v145_v33 = vsub.f32 %v1635_v18, %v144_v24  ;;  %v1678_v35 = vsub.f32 %v21_v13, %v1632_v17  ;;  %v16_v42 = vld [vmem:[%s2067_s1] sm:$0xff] }
   0x9   :  { %1289 = vmatprep.subr.mxu0 %v1560_v3  ;;  %v1681_v36 = vand.u32 4294901760, %v18_v26  ;;  %vm28_vm1 = vcmask 785408   ;;  %v152_v40 = vsub.f32 %v1642_v20, %v151_v27  ;;  %v165_v41 = vand.u32 4294901760, %v1662_v30 }
   0xa   :  { %1290 = vmatpush3.msra.mxu0 %v1609_v10  ;;  %v132_v38 = vand.u32 4294901760, %v131_v31  ;;  %v139_v39 = vand.u32 4294901760, %v138_v32  ;;  %v159_v43 = vsub.f32 %v1645_v21, %v158_v29  ;;  %v1700_v44 = vand.u32 4294901760, %v17_v34 }
   0xb   :  { %1291 = vmatprep.subr.mxu0 %v1560_v3  ;;  %v1703_v45 = vsub.f32 %v20_v14, %v1651_v25  ;;  %v146_v46 = vand.u32 4294901760, %v145_v33  ;;  %v172_v47 = vand.u32 4294901760, %v1678_v35  ;;  %v30_v48 = vsel %vm28_vm1, %v1686_v37, 0 }
   0xc   :  { %1292 = vmatpush3.msra.mxu0 %v1611_v11  ;;  %1311 = vmatpush3.msra.mxu1 %v132_v38  ;;  %v1710_v49 = vsub.f32 %v19_v19, %v1658_v28  ;;  %v1714_v50 = vand.u32 4294901760, %v16_v42  ;;  %v1716_v51 = vand.u32 4294901760, %v30_v48  ;;  %v153_v52 = vand.u32 4294901760, %v152_v40 }
   0xd   :  { %1293 = vmatprep.subr.mxu0 %v1560_v3  ;;  %1312 = vmatprep.subr.mxu1 %v1560_v3  ;;  %v166_v53 = vsub.f32 %v1662_v30, %v165_v41  ;;  %v179_v54 = vand.u32 4294901760, %v1703_v45  ;;  %v1724_v55 = vsub.f32 %v18_v26, %v1681_v36  ;;  %v160_v57 = vand.u32 4294901760, %v159_v43 }
   0xe   :  { %1294 = vmatpush3.msra.mxu0 %v1613_v12  ;;  %1313 = vmatpush3.msra.mxu1 %v139_v39  ;;  %v1729_v56 = vsub.f32 %v30_v48, %v1716_v51  ;;  %v173_v58 = vsub.f32 %v1678_v35, %v172_v47  ;;  %v186_v59 = vand.u32 4294901760, %v1710_v49  ;;  %v1737_v60 = vsub.f32 %v17_v34, %v1700_v44 }
   0xf   :  { %1295 = vmatprep.subr.mxu0 %v1560_v3  ;;  %1314 = vmatprep.subr.mxu1 %v1560_v3  ;;  %v167_v62 = vand.u32 4294901760, %v166_v53  ;;  %v180_v63 = vsub.f32 %v1703_v45, %v179_v54  ;;  %v193_v0 = vand.u32 4294901760, %v1724_v55  ;;  %v1748_v1 = vsub.f32 %v16_v42, %v1714_v50 }
  0x10   :  { %1296 = vmatpush3.msra.mxu0 %v1632_v17  ;;  %1315 = vmatpush3.msra.mxu1 %v146_v46  ;;  %v111_v61 = vand.u32 4294901760, %v1729_v56  ;;  %v174_v2 = vand.u32 4294901760, %v173_v58  ;;  %v187_v8 = vsub.f32 %v1710_v49, %v186_v59  ;;  %v200_v9 = vand.u32 4294901760, %v1737_v60 }
  0x11   :  { %1297 = vmatprep.subr.mxu0 %v1560_v3  ;;  %1316 = vmatprep.subr.mxu1 %v1560_v3  ;;  %v181_v13 = vand.u32 4294901760, %v180_v63  ;;  %v194_v14 = vsub.f32 %v1724_v55, %v193_v0  ;;  %v207_v19 = vand.u32 4294901760, %v1748_v1  ;;  %vm628_vm2 = vcmask 392192  }
  0x12   :  { %1298 = vmatpush3.msra.mxu0 %v1651_v25  ;;  %1317 = vmatpush3.msra.mxu1 %v153_v52  ;;  %v112_v7 = vsub.f32 %v1729_v56, %v111_v61  ;;  %v188_v31 = vand.u32 4294901760, %v187_v8  ;;  %v201_v32 = vsub.f32 %v1737_v60, %v200_v9 }
  0x13   :  { %1299 = vmatprep.subr.mxu0 %v1560_v3  ;;  %1318 = vmatprep.subr.mxu1 %v1560_v3  ;;  %v195_v33 = vand.u32 4294901760, %v194_v14  ;;  %v208_v34 = vsub.f32 %v1748_v1, %v207_v19 }
  0x14   :  { %1300 = vmatpush3.msra.mxu0 %v1658_v28  ;;  %1319 = vmatpush3.msra.mxu1 %v160_v57  ;;  %v113_v26 = vand.u32 4294901760, %v112_v7  ;;  %v202_v38 = vand.u32 4294901760, %v201_v32 }
  0x15   :  { %1301 = vmatprep.subr.mxu0 %v1560_v3  ;;  %1320 = vmatprep.subr.mxu1 %v1560_v3  ;;  %v209_v39 = vand.u32 4294901760, %v208_v34 }
  0x16   :  { %1302 = vmatpush3.msra.mxu0 %v1681_v36  ;;  %1321 = vmatpush3.msra.mxu1 %v167_v62 }
  0x17   :  { %1303 = vmatprep.subr.mxu0 %v1560_v3  ;;  %1322 = vmatprep.subr.mxu1 %v1560_v3 }
  0x18   :  { %1304 = vmatpush3.msra.mxu0 %v1700_v44  ;;  %1323 = vmatpush3.msra.mxu1 %v174_v2 }
  0x19   :  { %1305 = vmatprep.subr.mxu0 %v1560_v3  ;;  %1324 = vmatprep.subr.mxu1 %v1560_v3 }
  0x1a   :  { %1306 = vmatpush3.msra.mxu0 %v1714_v50  ;;  %1325 = vmatpush3.msra.mxu1 %v181_v13 }
  0x1b   :  { %1326 = vmatprep.subr.mxu1 %v1560_v3  ;;  %1337 = vmatprep.subr.mxu0 %v1560_v3 }
  0x1c   :  { %1308 = vmatmul.mubr.f32.vlgmr.msra.gmra.mxu0 %v113_v26  ;;  %1327 = vmatpush3.msra.mxu1 %v188_v31 }
  0x1d   :  { %1338 = vmatpush3.msra.mxu0 %v1627_v15  ;;  %1328 = vmatprep.subr.mxu1 %v1560_v3 }
  0x1e   :  { %1339 = vmatprep.subr.mxu0 %v1560_v3  ;;  %1329 = vmatpush3.msra.mxu1 %v195_v33 }
  0x1f   :  { %1340 = vmatpush3.msra.mxu0 %v1630_v16  ;;  %1330 = vmatprep.subr.mxu1 %v1560_v3 }
  0x20   :  { %1341 = vmatprep.subr.mxu0 %v1560_v3  ;;  %1331 = vmatpush3.msra.mxu1 %v202_v38 }
  0x21   :  { %1342 = vmatpush3.msra.mxu0 %v1635_v18  ;;  %1332 = vmatprep.subr.mxu1 %v1560_v3  ;;  %v624_v18 = vld [vmem:[%s2068_s2 + $0x10] sm:$0xff] }
  0x22   :  { %1343 = vmatprep.subr.mxu0 %v1560_v3  ;;  %1333 = vmatpush3.msra.mxu1 %v209_v39 }
  0x23   :  { %1344 = vmatpush3.msra.mxu0 %v1642_v20  ;;  %1335 = vmatmul.mubr.f32.vlgmr.msra.gmra.mxu1 %v1716_v51 }
  0x24   :  { %1345 = vmatprep.subr.mxu0 %v1560_v3  ;;  %1364 = vmatprep.subr.mxu1 %v1560_v3 }
  0x25   :  { %1346 = vmatpush3.msra.mxu0 %v1645_v21  ;;  %1365 = vmatpush3.msra.mxu1 %v1593_v4 }
  0x26   :  { %1347 = vmatprep.subr.mxu0 %v1560_v3  ;;  %1366 = vmatprep.subr.mxu1 %v1560_v3 }
  0x27   :  { %1348 = vmatpush3.msra.mxu0 %v1662_v30  ;;  %1367 = vmatpush3.msra.mxu1 %v1595_v5 }
  0x28   :  { %1349 = vmatprep.subr.mxu0 %v1560_v3  ;;  %1368 = vmatprep.subr.mxu1 %v1560_v3 }
  0x29   :  { %1350 = vmatpush3.msra.mxu0 %v1678_v35  ;;  %1369 = vmatpush3.msra.mxu1 %v1597_v6  ;;  %v622_v35 = vld [vmem:[%s2068_s2] sm:$0xff] }
  0x2a   :  { %1351 = vmatprep.subr.mxu0 %v1560_v3  ;;  %1370 = vmatprep.subr.mxu1 %v1560_v3  ;;  %v1972_v42 = vand.u32 4294901760, %v622_v35 }
  0x2b   :  { %1352 = vmatpush3.msra.mxu0 %v1703_v45  ;;  %1371 = vmatpush3.msra.mxu1 %v1609_v10 }
  0x2c   :  { %1353 = vmatprep.subr.mxu0 %v1560_v3  ;;  %1372 = vmatprep.subr.mxu1 %v1560_v3  ;;  %v1983_v46 = vsub.f32 %v622_v35, %v1972_v42 }
  0x2d   :  { %1354 = vmatpush3.msra.mxu0 %v1710_v49  ;;  %1373 = vmatpush3.msra.mxu1 %v1611_v11 }
  0x2e   :  { %1355 = vmatprep.subr.mxu0 %v1560_v3  ;;  %1374 = vmatprep.subr.mxu1 %v1560_v3  ;;  %v771_v49 = vand.u32 4294901760, %v1983_v46 }
  0x2f   :  { %1356 = vmatpush3.msra.mxu0 %v1724_v55  ;;  %1375 = vmatpush3.msra.mxu1 %v1613_v12 }
  0x30   :  { %1357 = vmatprep.subr.mxu0 %v1560_v3  ;;  %1376 = vmatprep.subr.mxu1 %v1560_v3 }
  0x31   :  { %1358 = vmatpush3.msra.mxu0 %v1737_v60  ;;  %1377 = vmatpush3.msra.mxu1 %v1632_v17 }
  0x32   :  { %1359 = vmatprep.subr.mxu0 %v1560_v3  ;;  %1378 = vmatprep.subr.mxu1 %v1560_v3 }
  0x33   :  { %1360 = vmatpush3.msra.mxu0 %v1748_v1  ;;  %1361 = vmatprep.mubr.msk.f32.mxu0 %vm1561_vm0, %v1560_v3 }
  0x34   :  { %1379 = vmatpush3.msra.mxu1 %v1651_v25  ;;  %1362 = vmatmul.mubr.f32.vlgmr.msra.gmra.mxu0 %v1729_v56 }
  0x35   :  { %1380 = vmatprep.subr.mxu1 %v1560_v3  ;;  %1391 = vmatprep.subr.mxu0 %v1560_v3 }
  0x36   :  { %1381 = vmatpush3.msra.mxu1 %v1658_v28  ;;  %1392 = vmatpush3.msra.mxu0 %v130_v22 }
  0x37   :  { %1382 = vmatprep.subr.mxu1 %v1560_v3  ;;  %1393 = vmatprep.subr.mxu0 %v1560_v3 }
  0x38   :  { %1383 = vmatpush3.msra.mxu1 %v1681_v36  ;;  %1394 = vmatpush3.msra.mxu0 %v137_v23  ;;  %v1947_v23 = vand.u32 4294901760, %v624_v18 }
  0x39   :  { %1384 = vmatprep.subr.mxu1 %v1560_v3  ;;  %1395 = vmatprep.subr.mxu0 %v1560_v3 }
  0x3a   :  { %1385 = vmatpush3.msra.mxu1 %v1700_v44  ;;  %1396 = vmatpush3.msra.mxu0 %v144_v24  ;;  %v623_v24 = vld [vmem:[%s2068_s2 + $0x8] sm:$0xff] }
  0x3b   :  { %1386 = vmatprep.subr.mxu1 %v1560_v3  ;;  %1397 = vmatprep.subr.mxu0 %v1560_v3  ;;  %v1962_v30 = vand.u32 4294901760, %v623_v24 }
  0x3c   :  { %1387 = vmatpush3.msra.mxu1 %v1714_v50  ;;  %1388 = vmatprep.mubr.msk.f32.mxu1 %vm1561_vm0, %v1560_v3 }
  0x3d   :  { %1398 = vmatpush3.msra.mxu0 %v151_v27  ;;  %1389 = vmatmul.mubr.f32.vlgmr.msra.gmra.mxu1 %v111_v61  ;;  %v1976_v43 = vsub.f32 %v623_v24, %v1962_v30 }
  0x3e   :  { %1399 = vmatprep.subr.mxu0 %v1560_v3  ;;  %1418 = vmatprep.subr.mxu1 %v1560_v3 }
  0x3f   :  { %1400 = vmatpush3.msra.mxu0 %v158_v29  ;;  %1419 = vmatpush3.msra.mxu1 %v1593_v4  ;;  %v627_v4 = vld [vmem:[%s2068_s2 + $0x28] sm:$0xff]  ;;  %v1959_v29 = vsub.f32 %v624_v18, %v1947_v23 }
  0x40   :  { %1401 = vmatprep.subr.mxu0 %v1560_v3  ;;  %1420 = vmatprep.subr.mxu1 %v1560_v3 }
  0x41   :  { %1402 = vmatpush3.msra.mxu0 %v165_v41  ;;  %1421 = vmatpush3.msra.mxu1 %v1595_v5  ;;  %v1914_v5 = vand.u32 4294901760, %v627_v4  ;;  %v757_v41 = vand.u32 4294901760, %v1959_v29 }
  0x42   :  { %1403 = vmatprep.subr.mxu0 %v1560_v3  ;;  %1422 = vmatprep.subr.mxu1 %v1560_v3 }
  0x43   :  { %1404 = vmatpush3.msra.mxu0 %v172_v47  ;;  %1423 = vmatpush3.msra.mxu1 %v1597_v6  ;;  %v626_v6 = vld [vmem:[%s2068_s2 + $0x20] sm:$0xff]  ;;  %v758_v45 = vsub.f32 %v1959_v29, %v757_v41  ;;  %v764_v47 = vand.u32 4294901760, %v1976_v43 }
  0x44   :  { %1405 = vmatprep.subr.mxu0 %v1560_v3  ;;  %1424 = vmatprep.subr.mxu1 %v1560_v3 }
  0x45   :  { %1406 = vmatpush3.msra.mxu0 %v179_v54  ;;  %1425 = vmatpush3.msra.mxu1 %v1609_v10  ;;  %v1920_v10 = vsub.f32 %v627_v4, %v1914_v5  ;;  %v759_v48 = vand.u32 4294901760, %v758_v45 }
  0x46   :  { %1407 = vmatprep.subr.mxu0 %v1560_v3  ;;  %1426 = vmatprep.subr.mxu1 %v1560_v3 }
  0x47   :  { %1408 = vmatpush3.msra.mxu0 %v186_v59  ;;  %1427 = vmatpush3.msra.mxu1 %v1611_v11  ;;  %v1922_v11 = vand.u32 4294901760, %v626_v6  ;;  %v736_v15 = vand.u32 4294901760, %v1920_v10 }
  0x48   :  { %1409 = vmatprep.subr.mxu0 %v1560_v3  ;;  %1428 = vmatprep.subr.mxu1 %v1560_v3 }
  0x49   :  { %1410 = vmatpush3.msra.mxu0 %v193_v0  ;;  %1429 = vmatpush3.msra.mxu1 %v1613_v12  ;;  %v625_v12 = vld [vmem:[%s2068_s2 + $0x18] sm:$0xff]  ;;  %v1931_v16 = vsub.f32 %v626_v6, %v1922_v11  ;;  %v737_v20 = vsub.f32 %v1920_v10, %v736_v15  ;;  %s1562_s2 = smov [#allocation2]  }
  0x4a   :  { %1411 = vmatprep.subr.mxu0 %v1560_v3  ;;  %1430 = vmatprep.subr.mxu1 %v1560_v3  ;;  %s1155_s21 = sshll.u32 %s1562_s2, 4  ;;  %s1156_s21 = int_to_ptr.vmem [resolvable:$true] %s1155_s21 }
  0x4b   :  { %1412 = vmatpush3.msra.mxu0 %v200_v9  ;;  %1431 = vmatpush3.msra.mxu1 %v1632_v17  ;;  %v1933_v17 = vand.u32 4294901760, %v625_v12  ;;  %v743_v21 = vand.u32 4294901760, %v1931_v16  ;;  %s1538_s22 = scalar_lea.vmem %s1156_s21, 128  ;;  %p1543_p1 = scmp.lt.s32.totalorder %s1156_s21, %s1156_s21 }
  0x4c   :  { %1413 = vmatprep.subr.mxu0 %v1560_v3  ;;  %1432 = vmatprep.subr.mxu1 %v1560_v3  ;;  %p1539_p0 = scmp.ne.s32.totalorder %s1156_s21, %s1538_s22  ;;  %p1544_p2 = scmp.lt.s32.totalorder %s1538_s22, %s1538_s22 }
  0x4d   :  { %1414 = vmatpush3.msra.mxu0 %v207_v19  ;;  %1415 = vmatprep.mubr.msk.f32.mxu0 %vm1561_vm0, %v1560_v3  ;;  %v1945_v22 = vsub.f32 %v625_v12, %v1933_v17  ;;  %v744_v27 = vsub.f32 %v1931_v16, %v743_v21 }
  0x4e   :  { %1433 = vmatpush3.msra.mxu1 %v1651_v25  ;;  %1416 = vmatmul.mubr.f32.vlgmr.msra.gmra.mxu0 %v1716_v51  ;;  %v738_v25 = vand.u32 4294901760, %v737_v20  ;;  %v1144_v20 = vlaneseq  ;;  %p1545_p3 = por %p1544_p2, %p1543_p1 }
  0x4f   :  { %1434 = vmatprep.subr.mxu1 %v1560_v3  ;;  %1442 = vmatprep.mubr.msk.f32.mxu1 %vm1561_vm0, %v1560_v3 }
  0x50   :  { %1435 = vmatpush3.msra.mxu1 %v1658_v28  ;;  %1445 = vmatprep.subr.mxu0 %v1560_v3  ;;  %v750_v28 = vand.u32 4294901760, %v1945_v22  ;;  %p1546_p4 = pnand %p1545_p3, %p1539_p0 }
  0x51   :  { %1436 = vmatprep.subr.mxu1 %v1560_v3  ;;  %1457 = vmatprep.mubr.msk.f32.mxu0 %vm1561_vm0, %v1560_v3 }
  0x52   :  { %1437 = vmatpush3.msra.mxu1 %v1681_v36  ;;  %1446 = vmatpush3.msra.mxu0 %v1914_v5  ;;  %v745_v36 = vand.u32 4294901760, %v744_v27  ;;  %v751_v40 = vsub.f32 %v1945_v22, %v750_v28 }
  0x53   :  { %1438 = vmatprep.subr.mxu1 %v1560_v3  ;;  %1447 = vmatprep.subr.mxu0 %v1560_v3 }
  0x54   :  { %1439 = vmatpush3.msra.mxu1 %v1700_v44  ;;  %1448 = vmatpush3.msra.mxu0 %v1922_v11  ;;  %v752_v44 = vand.u32 4294901760, %v751_v40 }
  0x55   :  { %1440 = vmatprep.subr.mxu1 %v1560_v3  ;;  %1449 = vmatprep.subr.mxu0 %v1560_v3 }
  0x56   :  { %1441 = vmatpush3.msra.mxu1 %v1714_v50  ;;  %1450 = vmatpush3.msra.mxu0 %v1933_v17  ;;  %v765_v50 = vsub.f32 %v1976_v43, %v764_v47 }
  0x57   :  { %1443 = vmatmul.mubr.f32.vlgmr.msra.gmra.mxu1 %v1716_v51  ;;  %1460 = vmatprep.subr.mxu1 %v1560_v3  ;;  %v772_v51 = vsub.f32 %v1983_v46, %v771_v49 }
  0x58   :  { %1472 = vmatprep.mubr.msk.f32.mxu1 %vm1561_vm0, %v1560_v3  ;;  %1451 = vmatprep.subr.mxu0 %v1560_v3  ;;  %v766_v52 = vand.u32 4294901760, %v765_v50 }
  0x59   :  { %1452 = vmatpush3.msra.mxu0 %v1947_v23  ;;  %1461 = vmatpush3.msra.mxu1 %v738_v25  ;;  %v773_v53 = vand.u32 4294901760, %v772_v51 }
  0x5a   :  { %1453 = vmatprep.subr.mxu0 %v1560_v3  ;;  %1462 = vmatprep.subr.mxu1 %v1560_v3 }
  0x5b   :  { %1454 = vmatpush3.msra.mxu0 %v1962_v30  ;;  %1463 = vmatpush3.msra.mxu1 %v745_v36 }
  0x5c   :  { %1455 = vmatprep.subr.mxu0 %v1560_v3  ;;  %1464 = vmatprep.subr.mxu1 %v1560_v3 }
  0x5d   :  { %1456 = vmatpush3.msra.mxu0 %v1972_v42  ;;  %1465 = vmatpush3.msra.mxu1 %v752_v44 }
  0x5e   :  { %1475 = vmatprep.subr.mxu0 %v1560_v3  ;;  %1466 = vmatprep.subr.mxu1 %v1560_v3 }
  0x5f   :  { %1467 = vmatpush3.msra.mxu1 %v759_v48 }
  0x60   :  { %1468 = vmatprep.subr.mxu1 %v1560_v3 }
  0x61   :  { %1469 = vmatpush3.msra.mxu1 %v766_v52 }
  0x62   :  { %1470 = vmatprep.subr.mxu1 %v1560_v3 }
  0x63   :  { %1471 = vmatpush3.msra.mxu1 %v773_v53 }
  0x64   :  { %1490 = vmatprep.subr.mxu1 %v1560_v3 }
  0xdc   :  { %v115_v54 = vpop.f32.mrf.mxu0 }
  0xde   :  { %v1309_v55 = vpop.f32.mrf.mxu0 }
  0xe3   :  { %v246_v56 = vpop.f32.mrf.mxu1 }
  0xe4   :  { %v247_v63 = vadd.f32 %v246_v56, %v115_v54 }
  0xe5   :  { %v1336_v57 = vpop.f32.mrf.mxu1 }
  0xf4   :  { %v342_v58 = vpop.f32.mrf.mxu0 }
  0xf5   :  { %v343_v1 = vadd.f32 %v342_v58, %v247_v63 }
  0xf6   :  { %v1363_v59 = vpop.f32.mrf.mxu0 }
  0xfd   :  { %v427_v60 = vpop.f32.mrf.mxu1 }
  0xfe   :  { %v428_v2 = vadd.f32 %v427_v60, %v343_v1 }
  0xff   :  { %v1390_v61 = vpop.f32.mrf.mxu1 }
 0x10e   :  { %v534_v62 = vpop.f32.mrf.mxu0 }
 0x10f   :  { %v535_v7 = vadd.f32 %v534_v62, %v428_v2 }
 0x110   :  { %v1417_v0 = vpop.f32.mrf.mxu0 }
 0x117   :  { %v617_v8 = vpop.f32.mrf.mxu1 }
 0x118   :  { %v618_v9 = vadd.f32 %v617_v8, %v535_v7 }
 0x119   :  { %v1444_v13 = vpop.f32.mrf.mxu1 }
 0x11a   :  { %v621_v14 = vmax.f32 %v618_v9, 0.0 }
 0x11c   :  { %v630_v19 = vsel %vm628_vm2, %v621_v14, 0 }
 0x11d   :  { %v703_v26 = vand.u32 4294901760, %v630_v19 }
 0x11f   :  { %v704_v31 = vsub.f32 %v630_v19, %v703_v26  ;;  %1473 = vmatmul.mubr.f32.vlgmr.msra.gmra.mxu1 %v703_v26 }
 0x120   :  { %1491 = vmatpush3.msra.mxu1 %v1914_v5  ;;  %1502 = vmatprep.mubr.msk.f32.mxu1 %vm1561_vm0, %v1560_v3 }
 0x121   :  { %v705_v32 = vand.u32 4294901760, %v704_v31  ;;  %1492 = vmatprep.subr.mxu1 %v1560_v3 }
 0x122   :  { %1493 = vmatpush3.msra.mxu1 %v1922_v11 }
 0x123   :  { %1494 = vmatprep.subr.mxu1 %v1560_v3  ;;  %v706_v33 = vsub.f32 %v704_v31, %v705_v32 }
 0x124   :  { %1495 = vmatpush3.msra.mxu1 %v1933_v17 }
 0x125   :  { %1496 = vmatprep.subr.mxu1 %v1560_v3  ;;  %v707_v34 = vand.u32 4294901760, %v706_v33 }
 0x126   :  { %1497 = vmatpush3.msra.mxu1 %v1947_v23 }
 0x127   :  { %1498 = vmatprep.subr.mxu1 %v1560_v3  ;;  %1458 = vmatmul.mubr.f32.vlgmr.msra.gmra.mxu0 %v707_v34 }
 0x128   :  { %1476 = vmatpush3.msra.mxu0 %v1920_v10  ;;  %1499 = vmatpush3.msra.mxu1 %v1962_v30 }
 0x129   :  { %1477 = vmatprep.subr.mxu0 %v1560_v3  ;;  %1500 = vmatprep.subr.mxu1 %v1560_v3 }
 0x12a   :  { %1478 = vmatpush3.msra.mxu0 %v1931_v16  ;;  %1501 = vmatpush3.msra.mxu1 %v1972_v42 }
 0x12b   :  { %1479 = vmatprep.subr.mxu0 %v1560_v3  ;;  %1503 = vmatmul.mubr.f32.vlgmr.msra.gmra.mxu1 %v705_v32 }
 0x12c   :  { %1520 = vmatprep.subr.mxu1 %v1560_v3  ;;  %1480 = vmatpush3.msra.mxu0 %v1945_v22 }
 0x12d   :  { %1521 = vmatpush3.msra.mxu1 %v1914_v5  ;;  %1481 = vmatprep.subr.mxu0 %v1560_v3 }
 0x12e   :  { %1522 = vmatprep.subr.mxu1 %v1560_v3  ;;  %1482 = vmatpush3.msra.mxu0 %v1959_v29 }
 0x12f   :  { %1523 = vmatpush3.msra.mxu1 %v1922_v11  ;;  %1483 = vmatprep.subr.mxu0 %v1560_v3 }
 0x130   :  { %1524 = vmatprep.subr.mxu1 %v1560_v3  ;;  %1484 = vmatpush3.msra.mxu0 %v1976_v43 }
 0x131   :  { %1525 = vmatpush3.msra.mxu1 %v1933_v17  ;;  %1485 = vmatprep.subr.mxu0 %v1560_v3 }
 0x132   :  { %1526 = vmatprep.subr.mxu1 %v1560_v3  ;;  %1486 = vmatpush3.msra.mxu0 %v1983_v46 }
 0x133   :  { %1487 = vmatprep.mubr.msk.f32.mxu0 %vm1561_vm0, %v1560_v3  ;;  %1527 = vmatpush3.msra.mxu1 %v1947_v23 }
 0x134   :  { %1488 = vmatmul.mubr.f32.vlgmr.msra.gmra.mxu0 %v704_v31  ;;  %1505 = vmatprep.subr.mxu0 %v1560_v3 }
 0x135   :  { %1528 = vmatprep.subr.mxu1 %v1560_v3  ;;  %1506 = vmatpush3.msra.mxu0 %v736_v15 }
 0x136   :  { %1529 = vmatpush3.msra.mxu1 %v1962_v30  ;;  %1507 = vmatprep.subr.mxu0 %v1560_v3 }
 0x137   :  { %1530 = vmatprep.subr.mxu1 %v1560_v3  ;;  %1508 = vmatpush3.msra.mxu0 %v743_v21 }
 0x138   :  { %1531 = vmatpush3.msra.mxu1 %v1972_v42  ;;  %1532 = vmatprep.mubr.msk.f32.mxu1 %vm1561_vm0, %v1560_v3 }
 0x139   :  { %1509 = vmatprep.subr.mxu0 %v1560_v3  ;;  %1533 = vmatmul.mubr.f32.vlgmr.msra.gmra.mxu1 %v703_v26 }
 0x13a   :  { %1510 = vmatpush3.msra.mxu0 %v750_v28  ;;  %1517 = vmatprep.mubr.msk.f32.mxu0 %vm1561_vm0, %v1560_v3 }
 0x13b   :  { %1511 = vmatprep.subr.mxu0 %v1560_v3 }
 0x13c   :  { %1512 = vmatpush3.msra.mxu0 %v757_v41 }
 0x13d   :  { %1513 = vmatprep.subr.mxu0 %v1560_v3 }
 0x13e   :  { %1514 = vmatpush3.msra.mxu0 %v764_v47 }
 0x13f   :  { %1515 = vmatprep.subr.mxu0 %v1560_v3  ;;  %v1145_v3 = vand.u32 127, %v1144_v20 }
 0x140   :  { %1516 = vmatpush3.msra.mxu0 %v771_v49 }
 0x141   :  { %1518 = vmatmul.mubr.f32.vlgmr.msra.gmra.mxu0 %v703_v26  ;;  %vm1146_vm3 = vcmp.lt.s32.totalorder %v1145_v3, 64 }
 0x1df   :  { %v810_v38 = vpop.f32.mrf.mxu1 }
 0x1e1   :  { %v1474_v39 = vpop.f32.mrf.mxu1 }
 0x1e7   :  { %v709_v4 = vpop.f32.mrf.mxu0 }
 0x1e8   :  { %v811_v16 = vadd.f32 %v810_v38, %v709_v4 }
 0x1e9   :  { %v1459_v5 = vpop.f32.mrf.mxu0 }
 0x1eb   :  { %v973_v6 = vpop.f32.mrf.mxu1 }
 0x1ed   :  { %v1504_v10 = vpop.f32.mrf.mxu1 }
 0x1f4   :  { %v894_v11 = vpop.f32.mrf.mxu0 }
 0x1f5   :  { %v895_v18 = vadd.f32 %v894_v11, %v811_v16 }
 0x1f6   :  { %v1489_v12 = vpop.f32.mrf.mxu0 }
 0x1f7   :  { %v974_v21 = vadd.f32 %v973_v6, %v895_v18 }
 0x1f9   :  { %v1139_v15 = vpop.f32.mrf.mxu1 }
 0x1fb   :  { %v1534_v17 = vpop.f32.mrf.mxu1 }
 0x201   :  { %v1062_v22 = vpop.f32.mrf.mxu0 }
 0x202   :  { %v1063_v23 = vadd.f32 %v1062_v22, %v974_v21 }
 0x203   :  { %v1519_v24 = vpop.f32.mrf.mxu0 }
 0x204   :  { %v1140_v25 = vadd.f32 %v1139_v15, %v1063_v23 }
 0x206   :  { %v1143_v27 = vmax.f32 %v1140_v25, 0.0 }
 0x208   :  { %v1147_v28 = vsel %vm1146_vm3, %v1686_v37, %v1143_v27 }
 0x209   :  { %1148 = vst.msk [vmem:[#allocation2] sm:$0xff] %vm28_vm1, %v1147_v28 }
 0x20a   :  { %1549 = shalt.err (!%p1546_p4)
}
 0x20b   :  { %1158 = dma.vmem_to_hbm [thread:$0]  %s1156_s21, 128, %s2069_s3, [#allocation3]  }
 0x20c   :  { %1558 = dma.done.wait [#allocation3], 128  }
 0x20d   :  { %1559 = vsyncadd [#allocation3], 4294967168 }
 0x20e   :  { %1162 = vsyncpa [#allocation3], 1 }

</bundles_post_ra>
